<compile_context>
chip_gen: v7x
topology: tpu7x:2x2x1
jax: 0.10.0
libtpu: 0.0.40
codegen_flags: <defaults>
</compile_context>

<pallas_src>
import functools

import jax
import jax.numpy as jnp
from jax import lax
from jax.experimental import pallas as pl
from jax.experimental.pallas import tpu as pltpu


def _spectral_normalize(w, n_iter=10, eps=1e-4):
    """W / sigma_max(W.reshape(out, -1)).
    PyTorch's spectral_norm runs 1 power iteration per forward with a persistent random u
    buffer; here we use a short deterministic power iteration in glue as the equivalent."""
    out_dim = w.shape[0]
    w_mat = w.reshape(out_dim, -1)
    u0 = jax.random.normal(jax.random.PRNGKey(1234), (out_dim,), jnp.float32)
    u0 = u0 / (jnp.linalg.norm(u0) + eps)

    def body(_, u):
        v = w_mat.T @ u
        v = v / (jnp.linalg.norm(v) + eps)
        u = w_mat @ v
        u = u / (jnp.linalg.norm(u) + eps)
        return u

    u = lax.fori_loop(0, n_iter, body, u0)
    v = w_mat.T @ u
    v = v / (jnp.linalg.norm(v) + eps)
    sigma = u @ (w_mat @ v)
    return w / sigma


def _choose_tile_rows(H, W, Cin, n_out, budget_bytes=2 << 20):
    """Pick a row-tile size TH (divisor of H) so the per-step working set stays a few MiB
    (fits comfortably on v7x's 64 MiB VMEM with double-buffering) and the grid has >= 2
    spatial steps per image for pipelining / megacore."""
    per_row = ((W + 2) * Cin * 4          # f32 input tile row
               + (W + 2) * Cin * 2        # bf16 activated row
               + 3 * W * Cin * 2          # bf16 per-kh im2col band row
               + W * n_out * 2)           # bf16 output row
    th = max(1, min(H, budget_bytes // max(per_row, 1)))
    if th >= H and H % 2 == 0:
        th = H // 2                       # guarantee >= 2 spatial grid steps per image
    while H % th:
        th -= 1
    return th


def _upblock_kernel(x_ref, a_ref, b_ref, w_ref, o_ref, *, W, TH, Cin, neg_slope):
    """One (batch, row-tile) step.

    x_ref: [1, 1, TH+2, W+2, Cin] f32  raw input rows with 1-row/1-col halo (global pads are 0)
    a_ref: [1, 1, Cin]            f32  (1+gamma)/std       (AdaIN + InstanceNorm folded, glue)
    b_ref: [1, 1, Cin]            f32  beta - a*mean
    w_ref: [3, 3*Cin, Np]         bf16 per-kh phase-folded conv weights (N padded to 128-mult)
    o_ref: [1, 1, TH*W, Np]       bf16 flat output tile (4 phases interleaved on the lane dim)
    """
    TH2, W2 = TH + 2, W + 2

    # ---- AdaIN affine + LeakyReLU (stats hoisted to glue) -------------------------------------
    x = x_ref[0, 0].astype(jnp.float32)                    # [TH+2, W+2, Cin]
    y = a_ref[...] * x + b_ref[...]
    y = jnp.where(y >= 0, y, neg_slope * y)

    # ---- re-zero the conv zero-padding positions (they became LeakyReLU(b) after the affine) --
    t = pl.program_id(1)
    nt = pl.num_programs(1)
    rows = lax.broadcasted_iota(jnp.int32, (TH2, W2, 1), 0)
    cols = lax.broadcasted_iota(jnp.int32, (TH2, W2, 1), 1)
    keep = (cols >= 1) & (cols <= W)
    keep = keep & ((rows >= 1) | (t > 0))                  # top halo row is pad only on tile 0
    keep = keep & ((rows <= TH) | (t < nt - 1))            # bottom halo row is pad only on last
    y = jnp.where(keep, y, 0.0).astype(jnp.bfloat16)       # single cast; bf16 from here on

    # ---- 3x3 conv on the (virtually) 2x-upsampled tensor, phase-folded weights.
    #      3 accumulating matmuls (one per kh), K = 3*Cin, f32 accumulation — no 9-tap slab. ----
    # NOTE: the kw taps could be built with pltpu.roll (XLU) instead of strided slices as a
    # further micro-opt; static slices are used here for lowering robustness.
    out = None
    for kh in range(3):
        band = y[kh:kh + TH]                                             # [TH, W+2, Cin]
        col = jnp.concatenate([band[:, kw:kw + W, :] for kw in range(3)],
                              axis=-1)                                   # [TH, W, 3*Cin]
        col = col.reshape(TH * W, 3 * Cin)
        part = jnp.dot(col, w_ref[kh], preferred_element_type=jnp.float32)
        out = part if out is None else out + part                        # [TH*W, Np] f32
    o_ref[0, 0] = out.astype(o_ref.dtype)


def upblock_forward(feat_nchw, cond, lin_w, lin_b, conv_w, *, tile_rows=None):
    """UpBlock forward.
    feat_nchw: [B, Cin, H, W] (PyTorch NCHW), cond: [B, cond_size]
    lin_w: [2*Cin, cond_size], lin_b: [2*Cin]   (AdaIN SN-linear)
    conv_w: [Cout, Cin, 3, 3]                   (SN conv, no bias)
    returns: [B, Cout, 2H, 2W] (NCHW, f32)
    """
    B, Cin, H, W = feat_nchw.shape
    Cout = conv_w.shape[0]
    H2, W2 = 2 * H, 2 * W

    # --- glue: spectral normalization (short power iteration) ---
    lin_w_sn = _spectral_normalize(lin_w)                    # [2Cin, cond_size]
    conv_w_sn = _spectral_normalize(conv_w)                  # [Cout, Cin, 3, 3]

    # --- glue: AdaIN affine (one batched matmul) + InstanceNorm stats, folded into (a, b).
    #     Nearest 2x upsample replicates pixels, so HxW stats == 2Hx2W stats. ---
    h = cond @ lin_w_sn.T + lin_b                            # [B, 2*Cin]
    scale = 1.0 + h[:, :Cin]                                 # (1 + gamma)   [B, Cin]
    beta = h[:, Cin:]                                        # [B, Cin]
    x_nhwc = jnp.transpose(feat_nchw, (0, 2, 3, 1))          # [B, H, W, Cin] f32
    mean = jnp.mean(x_nhwc, axis=(1, 2))                                      # [B, Cin]
    var = jnp.mean((x_nhwc - mean[:, None, None, :]) ** 2, axis=(1, 2))       # centered, exact
    inv_std = 1.0 / jnp.sqrt(var + 1e-5)
    a_vec = (scale * inv_std).reshape(B, 1, Cin)
    b_vec = (beta - scale * inv_std * mean).reshape(B, 1, Cin)

    # --- glue: fold the 2x nearest upsample into the 3x3 conv weights (4 output phases),
    #     laid out per-kh as [3, 3*Cin, Np] with N padded to a multiple of 128 (unmasked stores,
    #     full MXU N width). ---
    w_k = jnp.transpose(conv_w_sn, (2, 3, 1, 0))             # [kh, kw, Cin, Cout]
    A = jnp.asarray([[[1., 0., 0.], [0., 1., 1.], [0., 0., 0.]],   # di=0
                     [[0., 0., 0.], [1., 1., 0.], [0., 0., 1.]]],  # di=1
                    jnp.float32)                             # [di, kh', kh]
    w_eff = jnp.einsum('dpk,eql,klco->pqcdeo', A, A, w_k)    # [3, 3, Cin, 2, 2, Cout]
    Np = ((4 * Cout + 127) // 128) * 128
    w3 = w_eff.reshape(3, 3 * Cin, 4 * Cout)
    w3 = jnp.pad(w3, ((0, 0), (0, 0), (0, Np - 4 * Cout))).astype(jnp.bfloat16)

    # --- glue: row tiles with a 1-row halo (overlap materialized once in HBM; ~(TH+2)/TH cost).
    #     The zero rows/cols added here are the conv's zero padding; the kernel re-zeros them
    #     after the affine. ---
    TH = tile_rows if tile_rows is not None else _choose_tile_rows(H, W, Cin, Np)
    n_t = H // TH
    x_pad = jnp.pad(x_nhwc, ((0, 0), (1, 1), (1, 1), (0, 0)))          # [B, H+2, W+2, Cin]
    row_idx = (jnp.arange(n_t) * TH)[:, None] + jnp.arange(TH + 2)[None, :]
    x_tiles = jnp.take(x_pad, row_idx, axis=1)                         # [B, n_t, TH+2, W+2, Cin]
    # TODO(synk): for very large Cin on v5e, pass x_tiles as bf16 to halve the input HBM read.

    kernel = functools.partial(_upblock_kernel, W=W, TH=TH, Cin=Cin, neg_slope=0.2)
    out_t = pl.pallas_call(
        kernel,
        out_shape=jax.ShapeDtypeStruct((B, n_t, TH * W, Np), jnp.bfloat16),
        grid_spec=pltpu.PrefetchScalarGridSpec(
            num_scalar_prefetch=0,
            grid=(B, n_t),
            in_specs=[
                pl.BlockSpec((1, 1, TH + 2, W + 2, Cin), lambda b, t: (b, t, 0, 0, 0)),
                pl.BlockSpec((1, 1, Cin), lambda b, t: (b, 0, 0)),
                pl.BlockSpec((1, 1, Cin), lambda b, t: (b, 0, 0)),
                # Constant index_map -> fetched once; on v7x, pipeline_mode=pl.Buffered(1) here
                # would drop the second weight buffer if VMEM gets tight at large Cin/Cout.
                pl.BlockSpec((3, 3 * Cin, Np), lambda b, t: (0, 0, 0)),
            ],
            out_specs=pl.BlockSpec((1, 1, TH * W, Np), lambda b, t: (b, t, 0, 0)),
        ),
        compiler_params=pltpu.CompilerParams(
            dimension_semantics=("parallel", "parallel"),
            vmem_limit_bytes=48 * 1024 * 1024),   # <= 48 MiB: leaves headroom on v7x (64 MiB)
    )(x_tiles, a_vec, b_vec, w3)

    # --- glue: drop the lane padding, un-shuffle the 4 output phases, restore NCHW / f32 ---
    out = out_t[..., :4 * Cout].reshape(B, n_t, TH, W, 2, 2, Cout)     # [B,t,p,q,di,dj,co]
    out = jnp.transpose(out, (0, 1, 2, 4, 3, 5, 6)).reshape(B, H2, W2, Cout)
    return jnp.transpose(out, (0, 3, 1, 2)).astype(jnp.float32)        # NCHW


def upblock_reference(feat_nchw, cond, lin_w, lin_b, conv_w):
    """Pure-JAX NCHW reference mirroring the PyTorch module (for verification only)."""
    B, Cin, H, W = feat_nchw.shape
    lin_w_sn = _spectral_normalize(lin_w)
    conv_w_sn = _spectral_normalize(conv_w)
    x = jnp.repeat(jnp.repeat(feat_nchw, 2, axis=2), 2, axis=3)
    mean = jnp.mean(x, axis=(2, 3), keepdims=True)
    var = jnp.mean((x - mean) ** 2, axis=(2, 3), keepdims=True)
    norm = (x - mean) / jnp.sqrt(var + 1e-5)
    h = cond @ lin_w_sn.T + lin_b
    gamma = h[:, :Cin].reshape(B, Cin, 1, 1)
    beta = h[:, Cin:].reshape(B, Cin, 1, 1)
    y = (1.0 + gamma) * norm + beta
    y = jnp.where(y >= 0, y, 0.2 * y)
    return lax.conv_general_dilated(
        y, conv_w_sn, window_strides=(1, 1), padding=((1, 1), (1, 1)),
        dimension_numbers=("NCHW", "OIHW", "NCHW"))


if __name__ == "__main__":
    B, Cin, Cout, cond_size, H, W = 2, 4, 8, 32, 16, 16
    key = jax.random.PRNGKey(0)
    k1, k2, k3, k4, k5 = jax.random.split(key, 5)
    feat = jax.random.normal(k1, (B, Cin, H, W), jnp.float32)       # NCHW, like PyTorch
    cond = jax.random.normal(k2, (B, cond_size), jnp.float32)
    lin_w = 0.1 * jax.random.normal(k3, (2 * Cin, cond_size), jnp.float32)
    lin_b = 0.1 * jax.random.normal(k4, (2 * Cin,), jnp.float32)
    conv_w = 0.1 * jax.random.normal(k5, (Cout, Cin, 3, 3), jnp.float32)

    out = jax.block_until_ready(upblock_forward(feat, cond, lin_w, lin_b, conv_w))
    ref = jax.block_until_ready(upblock_reference(feat, cond, lin_w, lin_b, conv_w))

    assert out.shape == (B, Cout, 2 * H, 2 * W), out.shape
    # bf16 matmul inputs + bf16 kernel output (f32 accumulation) vs pure-f32 reference.
    max_err = float(jnp.max(jnp.abs(out - ref)))
    assert max_err < 5e-2, f"mismatch vs reference: {max_err}"
    print("KERNEL_OK")
</pallas_src>

<mosaic_0001>
module attributes {stable_mosaic.version = 11 : i64} {
  func.func @_upblock_kernel(%arg0: i32, %arg1: i32, %arg2: memref<1x1x10x18x4xf32, #tpu.memory_space<vmem>>, %arg3: memref<1x1x4xf32, #tpu.memory_space<vmem>>, %arg4: memref<1x1x4xf32, #tpu.memory_space<vmem>>, %arg5: memref<3x12x128xbf16, #tpu.memory_space<vmem>>, %arg6: memref<1x1x128x128xbf16, #tpu.memory_space<vmem>>) attributes {dimension_semantics = [#tpu.dimension_semantics<parallel>, #tpu.dimension_semantics<parallel>], iteration_bounds = array<i64: 2, 2>, scalar_prefetch = 0 : i64, scratch_operands = 0 : i64, tpu.core_type = #tpu.core_type<tc>, window_params = [{transform_indices = @transform_0, window_bounds = array<i64: 1, 1, 10, 18, 4>}, {transform_indices = @transform_1, window_bounds = array<i64: 1, 1, 4>}, {transform_indices = @transform_2, window_bounds = array<i64: 1, 1, 4>}, {pipeline_mode = #tpu.pipeline_mode<synchronous>, transform_indices = @transform_3, window_bounds = array<i64: 3, 12, 128>}, {transform_indices = @transform_4, window_bounds = array<i64: 1, 1, 128, 128>}]} {
    %c0 = arith.constant 0 : index
    %c0_0 = arith.constant 0 : index
    %c0_1 = arith.constant 0 : index
    %c0_2 = arith.constant 0 : index
    %c0_3 = arith.constant 0 : index
    %0 = vector.load %arg2[%c0, %c0_0, %c0_1, %c0_2, %c0_3] : memref<1x1x10x18x4xf32, #tpu.memory_space<vmem>>, vector<1x1x10x18x4xf32>
    %1 = vector.shape_cast %0 : vector<1x1x10x18x4xf32> to vector<10x18x4xf32>
    %c0_4 = arith.constant 0 : index
    %c0_5 = arith.constant 0 : index
    %c0_6 = arith.constant 0 : index
    %2 = vector.load %arg3[%c0_4, %c0_5, %c0_6] : memref<1x1x4xf32, #tpu.memory_space<vmem>>, vector<1x1x4xf32>
    %3 = vector.broadcast %2 : vector<1x1x4xf32> to vector<10x18x4xf32>
    %4 = arith.mulf %3, %1 : vector<10x18x4xf32>
    %c0_7 = arith.constant 0 : index
    %c0_8 = arith.constant 0 : index
    %c0_9 = arith.constant 0 : index
    %5 = vector.load %arg4[%c0_7, %c0_8, %c0_9] : memref<1x1x4xf32, #tpu.memory_space<vmem>>, vector<1x1x4xf32>
    %6 = vector.broadcast %5 : vector<1x1x4xf32> to vector<10x18x4xf32>
    %7 = arith.addf %4, %6 : vector<10x18x4xf32>
    %cst = arith.constant 0.000000e+00 : f32
    %8 = vector.broadcast %cst : f32 to vector<10x18x4xf32>
    %9 = arith.cmpf oge, %7, %8 : vector<10x18x4xf32>
    %cst_10 = arith.constant 2.000000e-01 : f32
    %10 = vector.broadcast %cst_10 : f32 to vector<10x18x4xf32>
    %11 = arith.mulf %10, %7 : vector<10x18x4xf32>
    %12 = arith.select %9, %7, %11 : vector<10x18x4xi1>, vector<10x18x4xf32>
    %13 = tpu.iota {dimensions = array<i32: 0>} : vector<10x18x1xi32>
    %14 = tpu.iota {dimensions = array<i32: 1>} : vector<10x18x1xi32>
    %c1_i32 = arith.constant 1 : i32
    %15 = vector.broadcast %c1_i32 : i32 to vector<10x18x1xi32>
    %16 = arith.cmpi sge, %14, %15 : vector<10x18x1xi32>
    %c16_i32 = arith.constant 16 : i32
    %17 = vector.broadcast %c16_i32 : i32 to vector<10x18x1xi32>
    %18 = arith.cmpi sle, %14, %17 : vector<10x18x1xi32>
    %19 = arith.andi %16, %18 : vector<10x18x1xi1>
    %c1_i32_11 = arith.constant 1 : i32
    %20 = vector.broadcast %c1_i32_11 : i32 to vector<10x18x1xi32>
    %21 = arith.cmpi sge, %13, %20 : vector<10x18x1xi32>
    %c0_i32 = arith.constant 0 : i32
    %22 = arith.cmpi sgt, %arg1, %c0_i32 : i32
    %23 = vector.broadcast %22 : i1 to vector<10x18x1xi1>
    %24 = arith.ori %21, %23 : vector<10x18x1xi1>
    %25 = arith.andi %19, %24 : vector<10x18x1xi1>
    %c8_i32 = arith.constant 8 : i32
    %26 = vector.broadcast %c8_i32 : i32 to vector<10x18x1xi32>
    %27 = arith.cmpi sle, %13, %26 : vector<10x18x1xi32>
    %c1_i32_12 = arith.constant 1 : i32
    %28 = arith.cmpi slt, %arg1, %c1_i32_12 : i32
    %29 = vector.broadcast %28 : i1 to vector<10x18x1xi1>
    %30 = arith.ori %27, %29 : vector<10x18x1xi1>
    %31 = arith.andi %25, %30 : vector<10x18x1xi1>
    %cst_13 = arith.constant 0.000000e+00 : f32
    %32 = vector.shape_cast %31 : vector<10x18x1xi1> to vector<10x18x1xi1>
    %33 = vector.broadcast %32 : vector<10x18x1xi1> to vector<10x18x4xi1>
    %34 = vector.broadcast %cst_13 : f32 to vector<10x18x4xf32>
    %35 = arith.select %33, %12, %34 : vector<10x18x4xi1>, vector<10x18x4xf32>
    %36 = arith.truncf %35 : vector<10x18x4xf32> to vector<10x18x4xbf16>
    %37 = vector.extract_strided_slice %36 {offsets = [0, 0, 0], sizes = [8, 18, 4], strides = [1, 1, 1]} : vector<10x18x4xbf16> to vector<8x18x4xbf16>
    %38 = vector.extract_strided_slice %37 {offsets = [0, 0, 0], sizes = [8, 16, 4], strides = [1, 1, 1]} : vector<8x18x4xbf16> to vector<8x16x4xbf16>
    %39 = vector.extract_strided_slice %37 {offsets = [0, 1, 0], sizes = [8, 16, 4], strides = [1, 1, 1]} : vector<8x18x4xbf16> to vector<8x16x4xbf16>
    %40 = vector.extract_strided_slice %37 {offsets = [0, 2, 0], sizes = [8, 16, 4], strides = [1, 1, 1]} : vector<8x18x4xbf16> to vector<8x16x4xbf16>
    %41 = tpu.concatenate %38, %39, %40 in 2 : vector<8x16x4xbf16>, vector<8x16x4xbf16>, vector<8x16x4xbf16> -> vector<8x16x12xbf16>
    %42 = vector.shape_cast %41 : vector<8x16x12xbf16> to vector<128x12xbf16>
    %c0_14 = arith.constant 0 : index
    %c0_15 = arith.constant 0 : index
    %c0_16 = arith.constant 0 : index
    %43 = vector.load %arg5[%c0_14, %c0_15, %c0_16] : memref<3x12x128xbf16, #tpu.memory_space<vmem>>, vector<1x12x128xbf16>
    %44 = vector.shape_cast %43 : vector<1x12x128xbf16> to vector<12x128xbf16>
    %cst_17 = arith.constant dense<0.000000e+00> : vector<128x128xf32>
    %45 = tpu.matmul %42, %44, %cst_17 {dimension_numbers = #tpu.dot_dimension_numbers<[1], [0], [0], [1], [0, 0, 1, 1], [], []>} : vector<128x12xbf16>, vector<12x128xbf16>, vector<128x128xf32> -> vector<128x128xf32>
    %46 = vector.extract_strided_slice %36 {offsets = [1, 0, 0], sizes = [8, 18, 4], strides = [1, 1, 1]} : vector<10x18x4xbf16> to vector<8x18x4xbf16>
    %47 = vector.extract_strided_slice %46 {offsets = [0, 0, 0], sizes = [8, 16, 4], strides = [1, 1, 1]} : vector<8x18x4xbf16> to vector<8x16x4xbf16>
    %48 = vector.extract_strided_slice %46 {offsets = [0, 1, 0], sizes = [8, 16, 4], strides = [1, 1, 1]} : vector<8x18x4xbf16> to vector<8x16x4xbf16>
    %49 = vector.extract_strided_slice %46 {offsets = [0, 2, 0], sizes = [8, 16, 4], strides = [1, 1, 1]} : vector<8x18x4xbf16> to vector<8x16x4xbf16>
    %50 = tpu.concatenate %47, %48, %49 in 2 : vector<8x16x4xbf16>, vector<8x16x4xbf16>, vector<8x16x4xbf16> -> vector<8x16x12xbf16>
    %51 = vector.shape_cast %50 : vector<8x16x12xbf16> to vector<128x12xbf16>
    %c1 = arith.constant 1 : index
    %c0_18 = arith.constant 0 : index
    %c0_19 = arith.constant 0 : index
    %52 = vector.load %arg5[%c1, %c0_18, %c0_19] : memref<3x12x128xbf16, #tpu.memory_space<vmem>>, vector<1x12x128xbf16>
    %53 = vector.shape_cast %52 : vector<1x12x128xbf16> to vector<12x128xbf16>
    %cst_20 = arith.constant dense<0.000000e+00> : vector<128x128xf32>
    %54 = tpu.matmul %51, %53, %cst_20 {dimension_numbers = #tpu.dot_dimension_numbers<[1], [0], [0], [1], [0, 0, 1, 1], [], []>} : vector<128x12xbf16>, vector<12x128xbf16>, vector<128x128xf32> -> vector<128x128xf32>
    %55 = arith.addf %45, %54 : vector<128x128xf32>
    %56 = vector.extract_strided_slice %36 {offsets = [2, 0, 0], sizes = [8, 18, 4], strides = [1, 1, 1]} : vector<10x18x4xbf16> to vector<8x18x4xbf16>
    %57 = vector.extract_strided_slice %56 {offsets = [0, 0, 0], sizes = [8, 16, 4], strides = [1, 1, 1]} : vector<8x18x4xbf16> to vector<8x16x4xbf16>
    %58 = vector.extract_strided_slice %56 {offsets = [0, 1, 0], sizes = [8, 16, 4], strides = [1, 1, 1]} : vector<8x18x4xbf16> to vector<8x16x4xbf16>
    %59 = vector.extract_strided_slice %56 {offsets = [0, 2, 0], sizes = [8, 16, 4], strides = [1, 1, 1]} : vector<8x18x4xbf16> to vector<8x16x4xbf16>
    %60 = tpu.concatenate %57, %58, %59 in 2 : vector<8x16x4xbf16>, vector<8x16x4xbf16>, vector<8x16x4xbf16> -> vector<8x16x12xbf16>
    %61 = vector.shape_cast %60 : vector<8x16x12xbf16> to vector<128x12xbf16>
    %c2 = arith.constant 2 : index
    %c0_21 = arith.constant 0 : index
    %c0_22 = arith.constant 0 : index
    %62 = vector.load %arg5[%c2, %c0_21, %c0_22] : memref<3x12x128xbf16, #tpu.memory_space<vmem>>, vector<1x12x128xbf16>
    %63 = vector.shape_cast %62 : vector<1x12x128xbf16> to vector<12x128xbf16>
    %cst_23 = arith.constant dense<0.000000e+00> : vector<128x128xf32>
    %64 = tpu.matmul %61, %63, %cst_23 {dimension_numbers = #tpu.dot_dimension_numbers<[1], [0], [0], [1], [0, 0, 1, 1], [], []>} : vector<128x12xbf16>, vector<12x128xbf16>, vector<128x128xf32> -> vector<128x128xf32>
    %65 = arith.addf %55, %64 : vector<128x128xf32>
    %66 = arith.truncf %65 : vector<128x128xf32> to vector<128x128xbf16>
    %c0_24 = arith.constant 0 : index
    %c0_25 = arith.constant 0 : index
    %c0_26 = arith.constant 0 : index
    %c0_27 = arith.constant 0 : index
    %67 = vector.load %arg6[%c0_24, %c0_25, %c0_26, %c0_27] : memref<1x1x128x128xbf16, #tpu.memory_space<vmem>>, vector<1x1x128x128xbf16>
    %68 = vector.shape_cast %67 : vector<1x1x128x128xbf16> to vector<128x128xbf16>
    %69 = vector.shape_cast %66 : vector<128x128xbf16> to vector<1x1x128x128xbf16>
    tpu.vector_store %arg6[%c0_24, %c0_25, %c0_26, %c0_27], %69 {strides = array<i32>} : memref<1x1x128x128xbf16, #tpu.memory_space<vmem>>, vector<1x1x128x128xbf16>,
    return
  }
  func.func @transform_0(%arg0: i32, %arg1: i32) -> (i32, i32, i32, i32, i32) {
    %c0_i32 = arith.constant 0 : i32
    %c0_i32_0 = arith.constant 0 : i32
    %c0_i32_1 = arith.constant 0 : i32
    %c0_i32_2 = arith.constant 0 : i32
    return %arg0, %arg1, %c0_i32, %c0_i32_0, %c0_i32_1 : i32, i32, i32, i32, i32
  }
  func.func @transform_1(%arg0: i32, %arg1: i32) -> (i32, i32, i32) {
    %c0_i32 = arith.constant 0 : i32
    %c0_i32_0 = arith.constant 0 : i32
    %c0_i32_1 = arith.constant 0 : i32
    return %arg0, %c0_i32, %c0_i32_0 : i32, i32, i32
  }
  func.func @transform_2(%arg0: i32, %arg1: i32) -> (i32, i32, i32) {
    %c0_i32 = arith.constant 0 : i32
    %c0_i32_0 = arith.constant 0 : i32
    %c0_i32_1 = arith.constant 0 : i32
    return %arg0, %c0_i32, %c0_i32_0 : i32, i32, i32
  }
  func.func @transform_3(%arg0: i32, %arg1: i32) -> (i32, i32, i32) {
    %c0_i32 = arith.constant 0 : i32
    %c0_i32_0 = arith.constant 0 : i32
    %c0_i32_1 = arith.constant 0 : i32
    %c0_i32_2 = arith.constant 0 : i32
    return %c0_i32, %c0_i32_0, %c0_i32_1 : i32, i32, i32
  }
  func.func @transform_4(%arg0: i32, %arg1: i32) -> (i32, i32, i32, i32) {
    %c0_i32 = arith.constant 0 : i32
    %c0_i32_0 = arith.constant 0 : i32
    %c0_i32_1 = arith.constant 0 : i32
    return %arg0, %arg1, %c0_i32, %c0_i32_0 : i32, i32, i32, i32
  }
}

</mosaic_0001>

<bundles_post_ra>
// kernel: tpu_custom_call.1
= control target key start
LH: loop header
LB: loop body
LE: loop exit
PB: predicated region body
PF: predicated region fallthrough
CT: control target
= control target key end

     0   :  { %9 = vsyncpa [#allocation3], 0  ;;  %s2326_s0 = inlined_call_operand.vmem [shape: f32[2,2,10,18,4], index: 0, kind: input, shape index: {}]   ;;  %s2327_s1 = inlined_call_operand.vmem [shape: f32[2,1,4], index: 1, kind: input, shape index: {}]   ;;  %s2328_s2 = inlined_call_operand.vmem [shape: f32[2,1,4], index: 2, kind: input, shape index: {}]   ;;  %s2329_s3 = inlined_call_operand.vmem [shape: bf16[3,12,128], index: 3, kind: input, shape index: {}]   ;;  %s2330_s4 = inlined_call_operand.hbm [shape: bf16[2,2,128,128], index: 4, kind: output, shape index: {}]  }
   0x1   :  { %11 = vsyncpa [#allocation3 + $0x1], 0  ;;  %s1810_s15 = smov 0   ;;  %s1812_s16 = smov 0  }
   0x2   :  { %s1814_s17 = smov 0   ;;  %s1816_s18 = smov 0  }
   0x3   :  { %s1818_s19 = smov 0   ;;  %s1820_s20 = smov 0  }
   0x4   :  { %s1822_s21 = smov 0   ;;  %s1824_s22 = smov 0  }
   0x5 LB: > { %2334 = sst [smem:[#allocation5_spill]] %s1775_s21  ;;  %s1362_s23 = sadd.s32 4294967295, %s1779_s22   ;;  %s1779_s22 = sphi %s1824_s22, %s17_s22   ;;  %s1775_s21 = sphi %s1822_s21, %s2351_s21   ;;  %s1771_s20 = sphi %s1820_s20, %s2356_s20   ;;  %s1767_s19 = sphi %s1818_s19, %s2349_s19   ;;  %s1763_s18 = sphi %s1816_s18, %s2355_s18   ;;  %s1759_s17 = sphi %s1814_s17, %s2354_s17   ;;  %s1755_s16 = sphi %s1812_s16, %s2353_s16   ;;  %s1751_s15 = sphi %s1810_s15, %s2352_s15  }
   0x6   : > { %s1363_s24 = sadd.s32 4294967294, %s1779_s22   ;;  %s26_s25 = sadd.s32 1, %s1771_s20 }
   0x7   : > { %p27_p0 = scmp.ge.s32.totalorder %s26_s25, 2  ;;  %s29_s26 = sadd.s32 1, %s1775_s21 }
   0x8   : > { %p149_p1 = scmp.ne.s32.totalorder %s1759_s17, %s1755_s16  ;;  %p150_p2 = scmp.eq.s32.totalorder %s1362_s23, 3 }
   0x9   : > { %s2358_s25 = smov (%p27_p0, %s26_s25), 0  ;;  %s2360_s26 = smov (!%p27_p0, %s29_s26), %s1775_s21 }
   0xa   : > { %2335 = sst [smem:[#allocation6_spill]] %s2358_s25  ;;  %s135_s27 = ssub.s32 %s1771_s20, %s2358_s25 }
   0xb   : > { %p1861_p3 = por %p150_p2, %p149_p1  ;;  %p31_p4 = scmp.ge.s32.totalorder %s2360_s26, 2 }
   0xc   : > { %p155_p5 = scmp.ne.s32.totalorder %s1755_s16, %s1751_s15  ;;  %p156_p6 = scmp.eq.s32.totalorder %s1363_s24, 3 }
   0xd   : > { %p1366_p7 = scmp.ge.s32.totalorder %s1779_s22, 1  ;;  %s2362_s26 = smov (%p31_p4, %s2360_s26), 0 }
   0xe   : > { %2337 = sst [smem:[#allocation7_spill]] %s2362_s26  ;;  %p1870_p8 = por %p156_p6, %p155_p5 }
   0xf   : > { %p201_p9 = scmp.lt.s32.totalorder %s1779_s22, 5  ;;  %s134_s30 = ssub.s32 %s1775_s21, %s2362_s26 }
  0x10   : > { %s139_s5 = sadd.s32 1, %s1759_s17  ;;  %s136_s6 = sor.u32 %s135_s27, %s134_s30 }
  0x11   : > { %p202_p10 = pnand %p1366_p7, %p201_p9  ;;  %p137_p11 = scmp.eq.s32.totalorder %s136_s6, 0 }
  0x12   : > { %p237_p12 = scmp.lt.s32.totalorder (!%p202_p10), %s1767_s19, 1  ;;  %p239_p13 = scmp.lt.s32.totalorder (!%p202_p10), %s1763_s18, 1  ;;  %v447_v0 = vlaneseq (!%p202_p10)  ;;  %vm677_vm3 = vcmask (!%p202_p10), 1046528   ;;  %vm548_vm10 = vsmask.f32 (!%p202_p10), 7424 }
  0x13   : > { %s1879_s7 = scalar_select %p137_p11, %s1759_s17, %s139_s5  }
  0x14   : > { %205 = sbr.rel (%p202_p10) target bundleno = 475 (0x1db), region = 36  ;;  %p460_p0 = scmp.gt.s32.totalorder (!%p202_p10), %s1763_s18, 0  ;;  %v1888_v1 = vshrl.u32 (!%p202_p10), %v447_v0, 7 }
  0x15   : > { %s1781_s25 = smov (!%p202_p10), 8   ;;  %s1782_s26 = smov (!%p202_p10), 4  }
  0x16   : > { %v1897_v2 = vadd.s32 (!%p202_p10), 16, %v1888_v1  ;;  %vm451_vm0 = vcmp.ge.s32.totalorder (!%p202_p10), %v1888_v1, 1 }
  0x18   : > { %vm456_vm1 = vcmp.le.s32.totalorder (!%p202_p10), %v1897_v2, 16 }
  0x1b   : > { %s238_s8 = scalar_select %p237_p12, %s1767_s19, 1 }
  0x1c   : > { %s240_s9 = scalar_select %p239_p13, %s1763_s18, 1 }
  0x1d   : > { %s1607_s10 = smul.u32 60, %s238_s8  ;;  %s248_s13 = scalar_lea.vmem %s2327_s1, %s238_s8 }
  0x1e   : > { %s1606_s14 = smul.u32 30, %s240_s9  ;;  %s251_s27 = scalar_lea.vmem %s2328_s2, %s238_s8  ;;  %v1899_v3 = vld [vmem:[%s248_s13] ss:$0 sm:$0xff] }
  0x1f   : > { %s461_s30 = scalar_select %p460_p0, 1, 0  ;;  %v1906_v4 = vld [vmem:[%s251_s27] ss:$0 sm:$0xff] }
  0x20   : > { %s243_s5 = sadd.s32 %s1607_s10, %s1606_s14  ;;  %s234_s14 = sand.u32 1, %s1755_s16  }
  0x21   : > { %s1368_s6 = sshll.u32 %s243_s5, 3  ;;  %v462_v5 = vstv %s461_s30  ;;  %s1367_s23 = sshll.u32 %s234_s14, 6 }
  0x22   : > { %s1904_s21 = scalar_lea.vmem %s2326_s0, %s1368_s6  ;;  %vm1922_vm2 = vcmp.eq.s32.totalorder %v462_v5, 1  ;;  %s2251_s24 = scalar_lea.vmem [#allocation2], %s1367_s23 }
  0x23   : > { %v253_v6 = vld [vmem:[%s1904_s21] sm:$0xff]  ;;  %v254_v7 = vld [vmem:[%s1904_s21 + $0x8] sm:$0xff]  ;;  %v255_v8 = vld [vmem:[%s1904_s21 + $0x10] sm:$0x3]  ;;  %s1914_s8 = scalar_select %p239_p13, 1, 0 }
  0x24   : > { %v290_v9 = vmul.f32 %v1899_v3, %v253_v6  ;;  %v291_v10 = vmul.f32 %v1899_v3, %v254_v7  ;;  %v292_v11 = vmul.f32 %v1899_v3, %v255_v8  ;;  %v259_v12 = vld [vmem:[%s1904_s21 + $0x30] sm:$0xff]  ;;  %v260_v13 = vld [vmem:[%s1904_s21 + $0x38] sm:$0xff]  ;;  %v261_v15 = vld [vmem:[%s1904_s21 + $0x40] sm:$0x3]  ;;  %s1419_s27 = sshll.u32 %s1763_s18, 4  ;;  %s1420_s30 = sshll.u32 %s1767_s19, 5 }
  0x25   : > { %v296_v16 = vmul.f32 %v1899_v3, %v259_v12  ;;  %v297_v17 = vmul.f32 %v1899_v3, %v260_v13  ;;  %v256_v18 = vld [vmem:[%s1904_s21 + $0x18] sm:$0xff]  ;;  %v472_v19 = vstv %s1914_s8  ;;  %v298_v23 = vmul.f32 %v1899_v3, %v261_v15  ;;  %v257_v24 = vld [vmem:[%s1904_s21 + $0x20] sm:$0xff]  ;;  %vm1944_vm7 = vmand %vm451_vm0, %vm1922_vm2  ;;  %s1256_s5 = sadd.s32 %s1420_s30, %s1419_s27  ;;  %s1259_s8 = sshll.u32 %s2251_s24, 4  ;;  %s2267_s8 = int_to_ptr.vmem [resolvable:$true] %s1259_s8 }
  0x26   : > { %v327_v20 = vadd.f32 %v1906_v4, %v290_v9  ;;  %v328_v21 = vadd.f32 %v1906_v4, %v291_v10  ;;  %v329_v22 = vadd.f32 %v1906_v4, %v292_v11  ;;  %v293_v27 = vmul.f32 %v1899_v3, %v256_v18  ;;  %vm466_vm8 = vmand %vm456_vm1, %vm1922_vm2  ;;  %v258_v40 = vld [vmem:[%s1904_s21 + $0x28] sm:$0x3]  ;;  %v265_v14 = vld [vmem:[%s1904_s21 + $0x60] sm:$0xff]  ;;  %s1421_s6 = sshll.u32 %s1256_s5, 6  ;;  %s1685_s9 = scalar_lea.vmem %s2267_s8, 1024 }
  0x27   : > { %v333_v25 = vadd.f32 %v1906_v4, %v296_v16  ;;  %v334_v26 = vadd.f32 %v1906_v4, %v297_v17  ;;  %v294_v28 = vmul.f32 %v1899_v3, %v257_v24  ;;  %v335_v33 = vadd.f32 %v1906_v4, %v298_v23  ;;  %p1686_p1 = scmp.ne.s32.totalorder %s2267_s8, %s1685_s9  ;;  %s1783_s10 = smov [#allocation2]  }
  0x28   : > { %vm357_vm4 = vcmp.ge.f32.partialorder %v327_v20, 0.0  ;;  %vm358_vm5 = vcmp.ge.f32.partialorder %v328_v21, 0.0  ;;  %vm359_vm6 = vcmp.ge.f32.partialorder %v329_v22, 0.0  ;;  %v387_v29 = vmul.f32 0.2, %v327_v20  ;;  %s1689_s11 = sshll.u32 %s1783_s10, 4  ;;  %s1690_s11 = int_to_ptr.vmem [resolvable:$false] %s1689_s11 }
  0x29   : > { %v388_v31 = vmul.f32 0.2, %v328_v21  ;;  %v389_v32 = vmul.f32 0.2, %v329_v22  ;;  %vm363_vm9 = vcmp.ge.f32.partialorder %v333_v25, 0.0  ;;  %vm364_vm11 = vcmp.ge.f32.partialorder %v334_v26, 0.0  ;;  %p1687_p2 = pnand %p1686_p1, %p1861_p3  ;;  %p1692_p5 = scmp.lt.s32.totalorder %s2267_s8, %s1690_s11 }
  0x2a   : > { %v417_v34 = vsel %vm357_vm4, %v327_v20, %v387_v29  ;;  %v393_v35 = vmul.f32 0.2, %v333_v25  ;;  %v394_v36 = vmul.f32 0.2, %v334_v26  ;;  %vm365_vm12 = vcmp.ge.f32.partialorder %v335_v33, 0.0  ;;  %v266_v20 = vld [vmem:[%s1904_s21 + $0x68] sm:$0xff] }
  0x2b   : > { %v418_v37 = vsel %vm358_vm5, %v328_v21, %v388_v31  ;;  %v419_v38 = vsel %vm359_vm6, %v329_v22, %v389_v32  ;;  %v498_v39 = vsel %vm1944_vm7, %v417_v34, 0.0  ;;  %v395_v43 = vmul.f32 0.2, %v335_v33  ;;  %v267_v21 = vld [vmem:[%s1904_s21 + $0x70] sm:$0x3]  ;;  %v262_v34 = vld [vmem:[%s1904_s21 + $0x48] sm:$0xff]  ;;  %p1688_p4 = pneg %p1687_p2 }
  0x2c   : > { %v499_v41 = vsel %vm1922_vm2, %v418_v37, 0.0  ;;  %v500_v42 = vsel %vm466_vm8, %v419_v38, 0.0  ;;  %v423_v44 = vsel %vm363_vm9, %v333_v25, %v393_v35  ;;  %v424_v47 = vsel %vm364_vm11, %v334_v26, %v394_v36  ;;  %s1691_s12 = scalar_lea.vmem %s1690_s11, 2048 }
  0x2d   : > { %v1958_v45 = vpack.c.bf16 %v499_v41, %v498_v39  ;;  %v529_v46 = vpack.c.bf16 %v500_v42, %v500_v42  ;;  %v504_v48 = vsel %vm451_vm0, %v423_v44, 0.0  ;;  %v425_v49 = vsel %vm365_vm12, %v335_v33, %v395_v43  ;;  %v263_v43 = vld [vmem:[%s1904_s21 + $0x50] sm:$0xff]  ;;  %p1693_p6 = scmp.lt.s32.totalorder %s1691_s12, %s1685_s9 }
  0x2e   : > { %v1962_v50 = vpack.c.bf16 %v424_v47, %v504_v48  ;;  %v295_v51 = vmul.f32 %v1899_v3, %v258_v40  ;;  %v330_v52 = vadd.f32 %v1906_v4, %v293_v27  ;;  %v506_v58 = vsel %vm456_vm1, %v425_v49, 0.0  ;;  %v264_v47 = vld [vmem:[%s1904_s21 + $0x58] sm:$0x3] }
  0x2f   : > { %v678_v53 = vrot.slane %v1958_v45, 1  ;;  %v679_v54 = vrot.slane %v529_v46, 1  ;;  %v550_v55 = vshrl.u32 %v1958_v45, 16  ;;  %v552_v56 = vshll.u32 %v1958_v45, 16  ;;  %p1694_p7 = por %p1693_p6, %p1692_p5 }
  0x30   : > { %v557_v57 = vshll.u32 %v529_v46, 16  ;;  %v574_v59 = vshrl.u32 %v1962_v50, 16  ;;  %v576_v60 = vshll.u32 %v1962_v50, 16  ;;  %v533_v63 = vpack.c.bf16 %v506_v58, %v506_v58 }
  0x31   : > { %v680_v61 = vsel %vm677_vm3, %v678_v53, %v679_v54  ;;  %v554_v62 = vrot.slane %v552_v56, 1  ;;  %v331_v0 = vadd.f32 %v1906_v4, %v294_v28  ;;  %v332_v7 = vadd.f32 %v1906_v4, %v295_v51  ;;  %p1695_p9 = pnand %p1694_p7, %p1688_p4 }
  0x32   : > { %702 = vrot.lane.b32.xlu1 %v680_v61, %s1781_s25  ;;  %v559_v5 = vrot.slane %v557_v57, 1  ;;  %v578_v6 = vrot.slane %v576_v60, 1  ;;  %vm360_vm13 = vcmp.ge.f32.partialorder %v330_v52, 0.0  ;;  %v581_v9 = vshll.u32 %v533_v63, 16  ;;  %v272_v61 = vld [vmem:[%s1904_s21 + $0x98] sm:$0xff] }
  0x33   : > { %v555_v8 = vor.u32 %v554_v62, %v550_v55  ;;  %vm361_vm14 = vcmp.ge.f32.partialorder %v331_v0, 0.0  ;;  %v390_v10 = vmul.f32 0.2, %v330_v52  ;;  %vm362_vm15 = vcmp.ge.f32.partialorder %v332_v7, 0.0 }
  0x34   : > { %v579_v11 = vor.u32 %v578_v6, %v574_v59  ;;  %v391_v12 = vmul.f32 0.2, %v331_v0  ;;  %v392_v13 = vmul.f32 0.2, %v332_v7  ;;  %v583_v16 = vrot.slane %v581_v9, 1 }
  0x35   : > { %v560_v15 = vsel %vm548_vm10, %v555_v8, %v559_v5  ;;  %v420_v17 = vsel %vm360_vm13, %v330_v52, %v390_v10  ;;  %v684_v18 = vrot.slane %v1962_v50, 1  ;;  %v685_v25 = vrot.slane %v533_v63, 1  ;;  %v271_v52 = vld [vmem:[%s1904_s21 + $0x90] sm:$0xff] }
  0x36   : > { %645 = vrot.lane.b32.xlu0 %v560_v15, %s1782_s26  ;;  %v421_v22 = vsel %vm361_vm14, %v331_v0, %v391_v12  ;;  %v422_v23 = vsel %vm362_vm15, %v332_v7, %v392_v13  ;;  %v501_v24 = vsel %vm451_vm0, %v420_v17, 0.0  ;;  %v584_v26 = vsel %vm548_vm10, %v579_v11, %v583_v16  ;;  %v273_v15 = vld [vmem:[%s1904_s21 + $0xa0] sm:$0x3] }
  0x37   : > { %v503_v27 = vsel %vm456_vm1, %v422_v23, 0.0  ;;  %v1988_v28 = vpack.c.bf16 %v421_v22, %v501_v24  ;;  %v302_v29 = vmul.f32 %v1899_v3, %v265_v14  ;;  %649 = vrot.lane.b32.xlu1 %v584_v26, %s1782_s26  ;;  %v686_v31 = vsel %vm677_vm3, %v684_v18, %v685_v25 }
  0x38   : > { %v531_v30 = vpack.c.bf16 %v503_v27, %v503_v27  ;;  %v303_v32 = vmul.f32 %v1899_v3, %v266_v20  ;;  %v304_v33 = vmul.f32 %v1899_v3, %v267_v21  ;;  %v299_v48 = vmul.f32 %v1899_v3, %v262_v34 }
  0x39   : > { %v562_v35 = vshrl.u32 %v1988_v28, 16  ;;  %v564_v36 = vshll.u32 %v1988_v28, 16  ;;  %v681_v37 = vrot.slane %v1988_v28, 1  ;;  %v339_v38 = vadd.f32 %v1906_v4, %v302_v29 }
  0x3a   : > { %v569_v39 = vshll.u32 %v531_v30, 16  ;;  %v682_v40 = vrot.slane %v531_v30, 1  ;;  %v340_v41 = vadd.f32 %v1906_v4, %v303_v32  ;;  %v341_v42 = vadd.f32 %v1906_v4, %v304_v33 }
  0x3b   : > { %v566_v44 = vrot.slane %v564_v36, 1  ;;  %vm369_vm2 = vcmp.ge.f32.partialorder %v339_v38, 0.0  ;;  %v399_v46 = vmul.f32 0.2, %v339_v38  ;;  %706 = vrot.lane.b32.xlu1 %v686_v31, %s1781_s25  ;;  %v300_v58 = vmul.f32 %v1899_v3, %v263_v43  ;;  %v269_v43 = vld [vmem:[%s1904_s21 + $0x80] sm:$0xff] }
  0x3c   : > { %v571_v49 = vrot.slane %v569_v39, 1  ;;  %v683_v51 = vsel %vm677_vm3, %v681_v37, %v682_v40  ;;  %vm370_vm4 = vcmp.ge.f32.partialorder %v340_v41, 0.0  ;;  %vm371_vm5 = vcmp.ge.f32.partialorder %v341_v42, 0.0 }
  0x3d   : > { %v567_v53 = vor.u32 %v566_v44, %v562_v35  ;;  %v400_v54 = vmul.f32 0.2, %v340_v41  ;;  %v401_v55 = vmul.f32 0.2, %v341_v42  ;;  %v429_v56 = vsel %vm369_vm2, %v339_v38, %v399_v46 }
  0x3e   : > { %v510_v57 = vsel %vm451_vm0, %v429_v56, 0.0  ;;  %v301_v59 = vmul.f32 %v1899_v3, %v264_v47  ;;  %v336_v60 = vadd.f32 %v1906_v4, %v299_v48  ;;  %v308_v5 = vmul.f32 %v1899_v3, %v271_v52  ;;  %v270_v47 = vld [vmem:[%s1904_s21 + $0x88] sm:$0x3] }
  0x3f   : > { %v572_v62 = vsel %vm548_vm10, %v567_v53, %v571_v49  ;;  %v430_v63 = vsel %vm370_vm4, %v340_v41, %v400_v54  ;;  %v431_v0 = vsel %vm371_vm5, %v341_v42, %v401_v55  ;;  %v337_v8 = vadd.f32 %v1906_v4, %v300_v58  ;;  %v268_v42 = vld [vmem:[%s1904_s21 + $0x78] sm:$0xff] }
  0x40   : > { %647 = vrot.lane.b32.xlu0 %v572_v62, %s1782_s26  ;;  %v512_v6 = vsel %vm456_vm1, %v431_v0, 0.0  ;;  %v2019_v7 = vpack.c.bf16 %v430_v63, %v510_v57  ;;  %v338_v9 = vadd.f32 %v1906_v4, %v301_v59  ;;  %vm366_vm6 = vcmp.ge.f32.partialorder %v336_v60, 0.0 }
  0x41   : > { %v537_v10 = vpack.c.bf16 %v512_v6, %v512_v6  ;;  %v396_v11 = vmul.f32 0.2, %v336_v60  ;;  %v309_v12 = vmul.f32 %v1899_v3, %v272_v61  ;;  %vm367_vm7 = vcmp.ge.f32.partialorder %v337_v8, 0.0 }
  0x42   : > { %v598_v13 = vshrl.u32 %v2019_v7, 16  ;;  %v600_v14 = vshll.u32 %v2019_v7, 16  ;;  %vm368_vm8 = vcmp.ge.f32.partialorder %v338_v9, 0.0  ;;  %v397_v17 = vmul.f32 0.2, %v337_v8 }
  0x43   : > { %v605_v16 = vshll.u32 %v537_v10, 16  ;;  %v398_v18 = vmul.f32 0.2, %v338_v9  ;;  %v426_v20 = vsel %vm366_vm6, %v336_v60, %v396_v11  ;;  %v690_v23 = vrot.slane %v2019_v7, 1 }
  0x44   : > { %704 = vrot.lane.b32.xlu0 %v683_v51, %s1781_s25  ;;  %v602_v21 = vrot.slane %v600_v14, 1  ;;  %v507_v22 = vsel %vm451_vm0, %v426_v20, 0.0  ;;  %v691_v24 = vrot.slane %v537_v10, 1  ;;  %v427_v26 = vsel %vm367_vm7, %v337_v8, %v397_v17  ;;  %v275_v20 = vld [vmem:[%s1904_s21 + $0xb0] sm:$0xff] }
  0x45   : > { %v607_v25 = vrot.slane %v605_v16, 1  ;;  %v428_v27 = vsel %vm368_vm8, %v338_v9, %v398_v18  ;;  %v310_v29 = vmul.f32 %v1899_v3, %v273_v15  ;;  %v2034_v32 = vpack.c.bf16 %v427_v26, %v507_v22  ;;  %v274_v18 = vld [vmem:[%s1904_s21 + $0xa8] sm:$0xff] }
  0x46   : > { %v603_v30 = vor.u32 %v602_v21, %v598_v13  ;;  %v509_v31 = vsel %vm456_vm1, %v428_v27, 0.0  ;;  %v692_v33 = vsel %vm677_vm3, %v690_v23, %v691_v24  ;;  %v345_v35 = vadd.f32 %v1906_v4, %v308_v5 }
  0x47   : > { %v535_v34 = vpack.c.bf16 %v509_v31, %v509_v31  ;;  %v346_v36 = vadd.f32 %v1906_v4, %v309_v12  ;;  %v347_v37 = vadd.f32 %v1906_v4, %v310_v29  ;;  %v586_v39 = vshrl.u32 %v2034_v32, 16 }
  0x48   : > { %v608_v38 = vsel %vm548_vm10, %v603_v30, %v607_v25  ;;  %v588_v40 = vshll.u32 %v2034_v32, 16  ;;  %v687_v41 = vrot.slane %v2034_v32, 1  ;;  %vm375_vm9 = vcmp.ge.f32.partialorder %v345_v35, 0.0  ;;  %v276_v30 = vld [vmem:[%s1904_s21 + $0xb8] sm:$0x3] }
  0x49   : > { %653 = vrot.lane.b32.xlu1 %v608_v38, %s1782_s26  ;;  %v593_v44 = vshll.u32 %v535_v34, 16  ;;  %v688_v46 = vrot.slane %v535_v34, 1  ;;  %vm376_vm11 = vcmp.ge.f32.partialorder %v346_v36, 0.0  ;;  %vm377_vm12 = vcmp.ge.f32.partialorder %v347_v37, 0.0 }
  0x4a   : > { %v590_v48 = vrot.slane %v588_v40, 1  ;;  %v405_v49 = vmul.f32 0.2, %v345_v35  ;;  %v406_v51 = vmul.f32 0.2, %v346_v36  ;;  %v305_v55 = vmul.f32 %v1899_v3, %v268_v42  ;;  %v277_v40 = vld [vmem:[%s1904_s21 + $0xc0] sm:$0xff] }
  0x4b   : > { %v595_v52 = vrot.slane %v593_v44, 1  ;;  %v689_v53 = vsel %vm677_vm3, %v687_v41, %v688_v46  ;;  %v407_v54 = vmul.f32 0.2, %v347_v37  ;;  %v306_v59 = vmul.f32 %v1899_v3, %v269_v43 }
  0x4c   : > { %v591_v56 = vor.u32 %v590_v48, %v586_v39  ;;  %v435_v57 = vsel %vm375_vm9, %v345_v35, %v405_v49  ;;  %v436_v58 = vsel %vm376_vm11, %v346_v36, %v406_v51  ;;  %v307_v62 = vmul.f32 %v1899_v3, %v270_v47 }
  0x4d   : > { %710 = vrot.lane.b32.xlu1 %v692_v33, %s1781_s25  ;;  %v437_v60 = vsel %vm377_vm12, %v347_v37, %v407_v54  ;;  %v516_v61 = vsel %vm451_vm0, %v435_v57, 0.0  ;;  %v342_v63 = vadd.f32 %v1906_v4, %v305_v55  ;;  %v343_v8 = vadd.f32 %v1906_v4, %v306_v59  ;;  %v279_v54 = vld [vmem:[%s1904_s21 + $0xd0] sm:$0x3]  ;;  %v280_v59 = vld [vmem:[%s1904_s21 + $0xd8] sm:$0xff] }
  0x4e   : > { %v596_v0 = vsel %vm548_vm10, %v591_v56, %v595_v52  ;;  %v518_v5 = vsel %vm456_vm1, %v437_v60, 0.0  ;;  %v2059_v6 = vpack.c.bf16 %v436_v58, %v516_v61  ;;  %v344_v10 = vadd.f32 %v1906_v4, %v307_v62 }
  0x4f   : > { %651 = vrot.lane.b32.xlu0 %v596_v0, %s1782_s26  ;;  %v541_v9 = vpack.c.bf16 %v518_v5, %v518_v5  ;;  %vm372_vm13 = vcmp.ge.f32.partialorder %v342_v63, 0.0  ;;  %v402_v11 = vmul.f32 0.2, %v342_v63  ;;  %vm373_vm14 = vcmp.ge.f32.partialorder %v343_v8, 0.0 }
  0x50   : > { %v622_v12 = vshrl.u32 %v2059_v6, 16  ;;  %v624_v13 = vshll.u32 %v2059_v6, 16  ;;  %v403_v14 = vmul.f32 0.2, %v343_v8  ;;  %vm374_vm15 = vcmp.ge.f32.partialorder %v344_v10, 0.0 }
  0x51   : > { %v629_v15 = vshll.u32 %v541_v9, 16  ;;  %v404_v16 = vmul.f32 0.2, %v344_v10  ;;  %v432_v17 = vsel %vm372_vm13, %v342_v63, %v402_v11  ;;  %v696_v24 = vrot.slane %v2059_v6, 1 }
  0x52   : > { %v626_v21 = vrot.slane %v624_v13, 1  ;;  %v433_v22 = vsel %vm373_vm14, %v343_v8, %v403_v14  ;;  %v513_v23 = vsel %vm451_vm0, %v432_v17, 0.0  ;;  %v697_v29 = vrot.slane %v541_v9, 1  ;;  %v281_v9 = vld [vmem:[%s1904_s21 + $0xe0] sm:$0xff] }
  0x53   : > { %708 = vrot.lane.b32.xlu0 %v689_v53, %s1781_s25  ;;  %v631_v25 = vrot.slane %v629_v15, 1  ;;  %v434_v26 = vsel %vm374_vm15, %v344_v10, %v404_v16  ;;  %v2072_v27 = vpack.c.bf16 %v433_v22, %v513_v23  ;;  %v311_v34 = vmul.f32 %v1899_v3, %v274_v18  ;;  %v278_v53 = vld [vmem:[%s1904_s21 + $0xc8] sm:$0xff] }
  0x54   : > { %v627_v31 = vor.u32 %v626_v21, %v622_v12  ;;  %v515_v33 = vsel %vm456_vm1, %v434_v26, 0.0  ;;  %v312_v35 = vmul.f32 %v1899_v3, %v275_v20  ;;  %v698_v39 = vsel %vm677_vm3, %v696_v24, %v697_v29  ;;  %v282_v21 = vld [vmem:[%s1904_s21 + $0xe8] sm:$0x3]  ;;  %s2273_s21 = scalar_lea.sflag [#allocation3], %s234_s14 }
  0x55   : > { %v539_v36 = vpack.c.bf16 %v515_v33, %v515_v33  ;;  %v610_v37 = vshrl.u32 %v2072_v27, 16  ;;  %v612_v38 = vshll.u32 %v2072_v27, 16  ;;  %v693_v42 = vrot.slane %v2072_v27, 1 }
  0x56   : > { %v632_v41 = vsel %vm548_vm10, %v627_v31, %v631_v25  ;;  %v313_v43 = vmul.f32 %v1899_v3, %v276_v30  ;;  %v348_v44 = vadd.f32 %v1906_v4, %v311_v34  ;;  %v349_v49 = vadd.f32 %v1906_v4, %v312_v35 }
  0x57   : > { %657 = vrot.lane.b32.xlu1 %v632_v41, %s1782_s26  ;;  %v614_v46 = vrot.slane %v612_v38, 1  ;;  %v617_v47 = vshll.u32 %v539_v36, 16  ;;  %v694_v48 = vrot.slane %v539_v36, 1  ;;  %v314_v55 = vmul.f32 %v1899_v3, %v277_v40 }
  0x58   : > { %v350_v51 = vadd.f32 %v1906_v4, %v313_v43  ;;  %vm378_vm2 = vcmp.ge.f32.partialorder %v348_v44, 0.0  ;;  %v408_v52 = vmul.f32 0.2, %v348_v44  ;;  %vm379_vm4 = vcmp.ge.f32.partialorder %v349_v49, 0.0 }
  0x59   : > { %v615_v56 = vor.u32 %v614_v46, %v610_v37  ;;  %v619_v57 = vrot.slane %v617_v47, 1  ;;  %v695_v58 = vsel %vm677_vm3, %v693_v42, %v694_v48  ;;  %v409_v60 = vmul.f32 0.2, %v349_v49 }
  0x5a   : > { %vm380_vm5 = vcmp.ge.f32.partialorder %v350_v51, 0.0  ;;  %v410_v61 = vmul.f32 0.2, %v350_v51  ;;  %v438_v62 = vsel %vm378_vm2, %v348_v44, %v408_v52  ;;  %v315_v5 = vmul.f32 %v1899_v3, %v278_v53  ;;  %v1682_v53 = vld [vmem:[%s2329_s3 + $0x8] sm:$0x3f]  }
  0x5b   : > { %v620_v63 = vsel %vm548_vm10, %v615_v56, %v619_v57  ;;  %714 = vrot.lane.b32.xlu1 %v698_v39, %s1781_s25  ;;  %v519_v0 = vsel %vm451_vm0, %v438_v62, 0.0  ;;  %v316_v8 = vmul.f32 %v1899_v3, %v279_v54  ;;  %v439_v10 = vsel %vm379_vm4, %v349_v49, %v409_v60  ;;  %v1683_v54 = vld [vmem:[%s2329_s3] sm:$0x3f]  }
  0x5c   : > { %655 = vrot.lane.b32.xlu0 %v620_v63, %s1782_s26  ;;  %v440_v11 = vsel %vm380_vm5, %v350_v51, %v410_v61  ;;  %v351_v12 = vadd.f32 %v1906_v4, %v314_v55  ;;  %v317_v13 = vmul.f32 %v1899_v3, %v280_v59  ;;  %v2107_v15 = vpack.c.bf16 %v439_v10, %v519_v0  ;;  %v1684_v61 = vld [vmem:[%s2329_s3 + $0x10] sm:$0x3f]  }
  0x5d   : > { %v521_v14 = vsel %vm456_vm1, %v440_v11, 0.0  ;;  %v352_v16 = vadd.f32 %v1906_v4, %v315_v5  ;;  %v353_v17 = vadd.f32 %v1906_v4, %v316_v8  ;;  %v318_v22 = vmul.f32 %v1899_v3, %v281_v9 }
  0x5e   : > { %v543_v18 = vpack.c.bf16 %v521_v14, %v521_v14  ;;  %vm381_vm6 = vcmp.ge.f32.partialorder %v351_v12, 0.0  ;;  %v411_v20 = vmul.f32 0.2, %v351_v12  ;;  %v634_v23 = vshrl.u32 %v2107_v15, 16 }
  0x5f   : > { %v636_v24 = vshll.u32 %v2107_v15, 16  ;;  %v699_v25 = vrot.slane %v2107_v15, 1  ;;  %vm382_vm7 = vcmp.ge.f32.partialorder %v352_v16, 0.0  ;;  %vm383_vm8 = vcmp.ge.f32.partialorder %v353_v17, 0.0 }
  0x60   : > { %712 = vrot.lane.b32.xlu0 %v695_v58, %s1781_s25  ;;  %v641_v26 = vshll.u32 %v543_v18, 16  ;;  %v700_v29 = vrot.slane %v543_v18, 1  ;;  %v412_v30 = vmul.f32 0.2, %v352_v16  ;;  %v413_v33 = vmul.f32 0.2, %v353_v17 }
  0x61   : > { %v638_v31 = vrot.slane %v636_v24, 1  ;;  %v441_v34 = vsel %vm381_vm6, %v351_v12, %v411_v20  ;;  %v319_v35 = vmul.f32 %v1899_v3, %v282_v21  ;;  %v354_v43 = vadd.f32 %v1906_v4, %v317_v13 }
  0x62   : > { %v643_v36 = vrot.slane %v641_v26, 1  ;;  %v701_v37 = vsel %vm677_vm3, %v699_v25, %v700_v29  ;;  %v442_v38 = vsel %vm382_vm7, %v352_v16, %v412_v30  ;;  %v522_v39 = vsel %vm451_vm0, %v441_v34, 0.0 }
  0x63   : > { %v639_v40 = vor.u32 %v638_v31, %v634_v23  ;;  %716 = vrot.lane.b32.xlu1 %v701_v37, %s1781_s25  ;;  %v443_v41 = vsel %vm383_vm8, %v353_v17, %v413_v33  ;;  %v2122_v42 = vpack.c.bf16 %v442_v38, %v522_v39  ;;  %v355_v3 = vadd.f32 %v1906_v4, %v318_v22 }
  0x64   : > { %v524_v44 = vsel %vm456_vm1, %v443_v41, 0.0  ;;  %v356_v46 = vadd.f32 %v1906_v4, %v319_v35  ;;  %vm2131_vm9 = vcmp.eq.s32.totalorder %v472_v19, 1  ;;  %vm384_vm11 = vcmp.ge.f32.partialorder %v354_v43, 0.0 }
  0x65   : > { %v644_v48 = vsel %vm548_vm10, %v639_v40, %v643_v36  ;;  %v545_v49 = vpack.c.bf16 %v524_v44, %v524_v44  ;;  %v755_v51 = vshrl.u32 %v2122_v42, 16  ;;  %v757_v52 = vshll.u32 %v2122_v42, 16  ;;  %vm2147_vm14 = vmand %vm456_vm1, %vm2131_vm9 }
  0x66   : > { %659 = vrot.lane.b32.xlu0 %v644_v48, %s1782_s26  ;;  %v770_v4 = vrot.slane %v2122_v42, 1  ;;  %vm385_vm12 = vcmp.ge.f32.partialorder %v355_v3, 0.0  ;;  %vm386_vm13 = vcmp.ge.f32.partialorder %v356_v46, 0.0  ;;  %v414_v58 = vmul.f32 0.2, %v354_v43  ;;  %vm2158_vm15 = vmand %vm451_vm0, %vm2131_vm9 }
  0x67   : > { %v759_v55 = vrot.slane %v757_v52, 1  ;;  %v762_v56 = vshll.u32 %v545_v49, 16  ;;  %v771_v57 = vrot.slane %v545_v49, 1  ;;  %v415_v2 = vmul.f32 0.2, %v355_v3 }
  0x68   : > { %v416_v60 = vmul.f32 0.2, %v356_v46  ;;  %v444_v5 = vsel %vm384_vm11, %v354_v43, %v414_v58  ;;  %vm804_vm0 = vcmask 1045504   ;;  %vm718_vm1 = vcmask 31744  }
  0x69   : > { %v760_v62 = vor.u32 %v759_v55, %v755_v51  ;;  %v764_v63 = vrot.slane %v762_v56, 1  ;;  %v772_v0 = vsel %vm677_vm3, %v770_v4, %v771_v57  ;;  %v445_v1 = vsel %vm385_vm12, %v355_v3, %v415_v2  ;;  %1602 = vmatprep.subr.msk.bf16.mxu1 %vm804_vm0, %v1682_v53  ;;  %1603 = vmatprep.subr.msk.bf16.mxu0 %vm804_vm0, %v1683_v54 }
  0x6a   : > { %773 = vrot.lane.b32.xlu1 %v772_v0, %s1781_s25  ;;  %v446_v8 = vsel %vm386_vm13, %v356_v46, %v416_v60  ;;  %v525_v9 = vsel %vm2158_vm15, %v444_v5, 0.0  ;;  %v526_v11 = vsel %vm2131_vm9, %v445_v1, 0.0  ;;  %v806_v13 = vsel %vm804_vm0, %v1682_v53, 0 }
  0x6b   : > { %v765_v10 = vsel %vm548_vm10, %v760_v62, %v764_v63  ;;  %v527_v12 = vsel %vm2147_vm14, %v446_v8, 0.0  ;;  %v2181_v14 = vpack.c.bf16 %v526_v11, %v525_v9  ;;  %1515 = vmatpush3.bf16.msra.mxu1 %v806_v13  ;;  %v913_v17 = vsel %vm804_vm0, %v1683_v54, 0 }
  0x6c   : > { %766 = vrot.lane.b32.xlu0 %v765_v10, %s1782_s26  ;;  %v547_v16 = vpack.c.bf16 %v527_v12, %v527_v12  ;;  %v1048_v18 = vsel %vm804_vm0, %v1684_v61, 0  ;;  %1533 = vmatpush3.bf16.msra.mxu0 %v913_v17  ;;  %vm735_vm2 = vcmask 64512   ;;  %vm787_vm4 = vcmask 97280  }
  0x6d   : > { %1604 = vmatprep.subr.msk.bf16.mxu1 %vm804_vm0, %v1683_v54  ;;  %v1013_v20 = vshrl.u32 %v2181_v14, 16  ;;  %v1015_v21 = vshll.u32 %v2181_v14, 16  ;;  %v1028_v23 = vrot.slane %v2181_v14, 1  ;;  %1605 = vmatprep.subr.msk.bf16.mxu0 %vm804_vm0, %v1684_v61 }
  0x6e   : > { %v1020_v22 = vshll.u32 %v547_v16, 16  ;;  %v1029_v24 = vrot.slane %v547_v16, 1 }
  0x6f   : > { %v1017_v25 = vrot.slane %v1015_v21, 1 }
  0x70   : > { %v1022_v26 = vrot.slane %v1020_v22, 1  ;;  %v1030_v29 = vsel %vm677_vm3, %v1028_v23, %v1029_v24 }
  0x71   : > { %v1018_v30 = vor.u32 %v1017_v25, %v1013_v20  ;;  %1031 = vrot.lane.b32.xlu1 %v1030_v29, %s1781_s25  ;;  %s2265_s25 = scalar_lea.hbm %s2330_s4, %s1421_s6 }
  0x73   : > { %v1023_v31 = vsel %vm548_vm10, %v1018_v30, %v1022_v26 }
  0x74   : > { %1024 = vrot.lane.b32.xlu0 %v1023_v31, %s1782_s26 }
  0xa4   : > { %v703_v34 = vpop.permute.xlu1 %702 }
  0xa8   : > { %v646_v33 = vpop.permute.xlu0 %645 }
  0xa9   : > { %v720_v35 = vsel %vm718_vm1, %v1958_v45, %v646_v33  ;;  %v650_v37 = vpop.permute.xlu1 %649 }
  0xaa   : > { %v737_v36 = vsel %vm735_vm2, %v720_v35, %v703_v34  ;;  %v724_v39 = vsel %vm718_vm1, %v1962_v50, %v650_v37 }
  0xab   : > { %1534 = vmatprep.mubr.msk.bf16.mxu0 %vm787_vm4, %v737_v36 }
  0xad   : > { %v707_v40 = vpop.permute.xlu1 %706 }
  0xae   : > { %v741_v3 = vsel %vm735_vm2, %v724_v39, %v707_v40 }
  0xb2   : > { %v648_v38 = vpop.permute.xlu0 %647 }
  0xb3   : > { %v722_v41 = vsel %vm718_vm1, %v1988_v28, %v648_v38 }
  0xb6   : > { %v705_v43 = vpop.permute.xlu0 %704 }
  0xb7   : > { %v739_v44 = vsel %vm735_vm2, %v722_v41, %v705_v43 }
  0xb8   : > { %1516 = vmatprep.mubr.msk.bf16.mxu1 %vm787_vm4, %v739_v44  ;;  %1535 = vmatmul.mubr.msk.bf16.vlgmr.msra.gmra.mrb[0].mxu0 %vm787_vm4, %v739_v44 }
  0xb9   : > { %1517 = vmatmul.mubr.msk.bf16.vlgmr.msra.gmra.mrb[0].mxu1 %vm787_vm4, %v741_v3  ;;  %1538 = vmatprep.mubr.msk.bf16.mxu0 %vm787_vm4, %v741_v3 }
  0xba   : > { %1569 = vmatpush3.bf16.msra.mxu1 %v913_v17  ;;  %1551 = vmatpush3.bf16.msra.mxu0 %v1048_v18 }
  0xbb   : > { %v654_v45 = vpop.permute.xlu1 %653 }
  0xbc   : > { %v728_v28 = vsel %vm718_vm1, %v2019_v7, %v654_v45 }
  0xbf   : > { %v711_v46 = vpop.permute.xlu1 %710 }
  0xc0   : > { %v745_v51 = vsel %vm735_vm2, %v728_v28, %v711_v46 }
  0xc1   : > { %v652_v50 = vpop.permute.xlu0 %651 }
  0xc2   : > { %v726_v47 = vsel %vm718_vm1, %v2034_v32, %v652_v50 }
  0xc5   : > { %v709_v48 = vpop.permute.xlu0 %708 }
  0xc6   : > { %v743_v49 = vsel %vm735_vm2, %v726_v47, %v709_v48 }
  0xc7   : > { %1520 = vmatprep.mubr.msk.bf16.mxu1 %vm787_vm4, %v743_v49  ;;  %1539 = vmatmul.mubr.msk.bf16.gmra.mrb[4].mxu0 %vm787_vm4, %v743_v49 }
  0xc8   : > { %1521 = vmatmul.mubr.msk.bf16.gmra.mrb[4].mxu1 %vm787_vm4, %v745_v51  ;;  %1552 = vmatprep.mubr.msk.bf16.mxu0 %vm787_vm4, %v741_v3 }
  0xc9   : > { %v658_v52 = vpop.permute.xlu1 %657 }
  0xca   : > { %v732_v7 = vsel %vm718_vm1, %v2059_v6, %v658_v52 }
  0xcd   : > { %v715_v32 = vpop.permute.xlu1 %714 }
  0xce   : > { %v656_v53 = vpop.permute.xlu0 %655  ;;  %v749_v55 = vsel %vm735_vm2, %v732_v7, %v715_v32 }
  0xcf   : > { %1553 = vmatmul.mubr.msk.bf16.vlgmr.msra.gmra.mrb[0].mxu0 %vm787_vm4, %v743_v49  ;;  %v730_v4 = vsel %vm718_vm1, %v2072_v27, %v656_v53 }
  0xd0   : > { %1556 = vmatprep.mubr.msk.bf16.mxu0 %vm787_vm4, %v745_v51 }
  0xd2   : > { %v713_v19 = vpop.permute.xlu0 %712 }
  0xd3   : > { %v747_v54 = vsel %vm735_vm2, %v730_v4, %v713_v19 }
  0xd4   : > { %1524 = vmatprep.mubr.msk.bf16.mxu1 %vm787_vm4, %v747_v54 }
  0xd5   : > { %1525 = vmatmul.mubr.msk.bf16.gmra.mrb[8].mxu1 %vm787_vm4, %v749_v55  ;;  %v717_v56 = vpop.permute.xlu1 %716 }
  0xd7   : > { %1557 = vmatmul.mubr.msk.bf16.gmra.mrb[4].mxu0 %vm787_vm4, %v747_v54 }
  0xd8   : > { %v660_v57 = vpop.permute.xlu0 %659  ;;  %1560 = vmatprep.mubr.msk.bf16.mxu0 %vm787_vm4, %v749_v55 }
  0xd9   : > { %v734_v6 = vsel %vm718_vm1, %v2107_v15, %v660_v57 }
  0xda   : > { %v751_v27 = vsel %vm735_vm2, %v734_v6, %v717_v56 }
  0xdb   : > { %1528 = vmatprep.mubr.msk.bf16.mxu1 %vm787_vm4, %v751_v27 }
  0xdc   : > { %v774_v58 = vpop.permute.xlu1 %773 }
  0xde   : > { %v767_v59 = vpop.permute.xlu0 %766 }
  0xdf   : > { %v776_v2 = vsel %vm718_vm1, %v2122_v42, %v767_v59  ;;  %1561 = vmatmul.mubr.msk.bf16.gmra.mrb[8].mxu0 %vm787_vm4, %v751_v27 }
  0xe0   : > { %v778_v60 = vsel %vm735_vm2, %v776_v2, %v774_v58 }
  0xe1   : > { %1529 = vmatmul.mubr.msk.bf16.gmra.mrb[12].mxu1 %vm787_vm4, %v778_v60  ;;  %1564 = vmatprep.mubr.msk.bf16.mxu0 %vm787_vm4, %v778_v60 }
  0xe2   : > { %1542 = vmatprep.mubr.msk.bf16.mxu1 %vm787_vm4, %v745_v51 }
  0xe3   : > { %v1032_v15 = vpop.permute.xlu1 %1031 }
  0xe6   : > { %v1025_v61 = vpop.permute.xlu0 %1024 }
  0xe7   : > { %v1034_v62 = vsel %vm718_vm1, %v2181_v14, %v1025_v61 }
  0xe8   : > { %v1036_v42 = vsel %vm735_vm2, %v1034_v62, %v1032_v15 }
  0xe9   : > { %1543 = vmatmul.mubr.msk.bf16.vlgmr.msra.gmra.mrb[8].mxu1 %vm787_vm4, %v747_v54  ;;  %1565 = vmatmul.mubr.msk.bf16.gmra.mrb[12].mxu0 %vm787_vm4, %v1036_v42 }
  0xea   : > { %1546 = vmatprep.mubr.msk.bf16.mxu1 %vm787_vm4, %v749_v55 }
  0xf1   : > { %1547 = vmatmul.mubr.msk.bf16.gmra.mrb[12].mxu1 %vm787_vm4, %v751_v27 }
 0x18c   : > { %v1518_v63 = vpop.f32.mrb[0].mxu1 }
 0x18d   : > { %v842_v0 = vpop.f32.mrb[1].mxu1 }
 0x18e   : > { %v1519_v5 = vpop.f32.mrb[2].mxu1 }
 0x18f   : > { %v845_v1 = vpop.f32.mrb[3].mxu1 }
 0x19b   : > { %v1522_v8 = vpop.f32.mrb[4].mxu1 }
 0x19c   : > { %v858_v9 = vpop.f32.mrb[5].mxu1 }
 0x19d   : > { %v1523_v10 = vpop.f32.mrb[6].mxu1 }
 0x19e   : > { %v861_v11 = vpop.f32.mrb[7].mxu1 }
 0x1a2   : > { %v1554_v12 = vpop.f32.mrb[0].mxu0 }
 0x1a3   : > { %v1570_v13 = vadd.f32 %v1554_v12, %v1518_v63  ;;  %v1084_v14 = vpop.f32.mrb[1].mxu0 }
 0x1a4   : > { %v1571_v16 = vadd.f32 %v1084_v14, %v842_v0  ;;  %v1555_v17 = vpop.f32.mrb[2].mxu0 }
 0x1a5   : > { %v1572_v18 = vadd.f32 %v1555_v17, %v1519_v5  ;;  %v1087_v20 = vpop.f32.mrb[3].mxu0 }
 0x1a6   : > { %v1573_v21 = vadd.f32 %v1087_v20, %v845_v1 }
 0x1a7   : > { %v1448_v22 = vpack.c.bf16 %v1572_v18, %v1570_v13 }
 0x1a8   : > { %v1443_v23 = vpack.c.bf16 %v1573_v21, %v1571_v16 }
 0x1a9   : > { %1480 = vst [vmem:[%s2251_s24 + $0x8] sm:$0xff] %v1448_v22  }
 0x1aa   : > { %1444 = vst [vmem:[%s2251_s24] sm:$0xff] %v1443_v23   ;;  %v1558_v24 = vpop.f32.mrb[4].mxu0 }
 0x1ab   : > { %v1574_v25 = vadd.f32 %v1558_v24, %v1522_v8  ;;  %v1100_v26 = vpop.f32.mrb[5].mxu0 }
 0x1ac   : > { %v1575_v29 = vadd.f32 %v1100_v26, %v858_v9  ;;  %v1559_v30 = vpop.f32.mrb[6].mxu0 }
 0x1ad   : > { %v1576_v31 = vadd.f32 %v1559_v30, %v1523_v10  ;;  %v1103_v33 = vpop.f32.mrb[7].mxu0 }
 0x1ae   : > { %v1577_v34 = vadd.f32 %v1103_v33, %v861_v11 }
 0x1af   : > { %v1458_v35 = vpack.c.bf16 %v1576_v31, %v1574_v25 }
 0x1b0   : > { %v1453_v36 = vpack.c.bf16 %v1577_v34, %v1575_v29 }
 0x1b1   : > { %1482 = vst [vmem:[%s2251_s24 + $0x18] sm:$0xff] %v1458_v35  }
 0x1b2   : > { %1481 = vst [vmem:[%s2251_s24 + $0x10] sm:$0xff] %v1453_v36   ;;  %v1562_v37 = vpop.f32.mrb[8].mxu0 }
 0x1b3   : > { %v1116_v38 = vpop.f32.mrb[9].mxu0 }
 0x1b4   : > { %v1563_v39 = vpop.f32.mrb[10].mxu0 }
 0x1b5   : > { %v1119_v40 = vpop.f32.mrb[11].mxu0 }
 0x1bc   : > { %v1544_v41 = vpop.f32.mrb[8].mxu1  ;;  %v1566_v3 = vpop.f32.mrb[12].mxu0 }
 0x1bd   : > { %v1578_v43 = vadd.f32 %v1562_v37, %v1544_v41  ;;  %v981_v44 = vpop.f32.mrb[9].mxu1  ;;  %v1132_v28 = vpop.f32.mrb[13].mxu0 }
 0x1be   : > { %v1579_v45 = vadd.f32 %v1116_v38, %v981_v44  ;;  %v1545_v50 = vpop.f32.mrb[10].mxu1  ;;  %v1567_v48 = vpop.f32.mrb[14].mxu0 }
 0x1bf   : > { %v1580_v46 = vadd.f32 %v1563_v39, %v1545_v50  ;;  %v984_v47 = vpop.f32.mrb[11].mxu1  ;;  %v1135_v51 = vpop.f32.mrb[15].mxu0 }
 0x1c0   : > { %v1581_v49 = vadd.f32 %v1119_v40, %v984_v47 }
 0x1c1   : > { %v1468_v52 = vpack.c.bf16 %v1580_v46, %v1578_v43 }
 0x1c2   : > { %v1463_v53 = vpack.c.bf16 %v1581_v49, %v1579_v45 }
 0x1c3   : > { %1484 = vst [vmem:[%s2251_s24 + $0x28] sm:$0xff] %v1468_v52  }
 0x1c4   : > { %1483 = vst [vmem:[%s2251_s24 + $0x20] sm:$0xff] %v1463_v53   ;;  %v1548_v7 = vpop.f32.mrb[12].mxu1 }
 0x1c5   : > { %v1582_v32 = vadd.f32 %v1566_v3, %v1548_v7  ;;  %v997_v4 = vpop.f32.mrb[13].mxu1 }
 0x1c6   : > { %v1583_v19 = vadd.f32 %v1132_v28, %v997_v4  ;;  %v1549_v54 = vpop.f32.mrb[14].mxu1 }
 0x1c7   : > { %v1584_v55 = vadd.f32 %v1567_v48, %v1549_v54  ;;  %v1000_v56 = vpop.f32.mrb[15].mxu1 }
 0x1c8   : > { %v1585_v57 = vadd.f32 %v1135_v51, %v1000_v56 }
 0x1c9   : > { %v1478_v6 = vpack.c.bf16 %v1584_v55, %v1582_v32 }
 0x1ca   : > { %v1473_v27 = vpack.c.bf16 %v1585_v57, %v1583_v19 }
 0x1cb   : > { %1486 = vst [vmem:[%s2251_s24 + $0x38] sm:$0xff] %v1478_v6  }
 0x1cc   : > { %1485 = vst [vmem:[%s2251_s24 + $0x30] sm:$0xff] %v1473_v27  }
 0x1cd   : > { %1698 = shalt.err (!%p1695_p9)
}
 0x1ce   : > { %s1699_s13 = scalar_lea.hbm %s2265_s25, 1024  ;;  %s1703_s24 = scalar_lea.hbm %s2330_s4, 4096 }
 0x1cf   : > { %p1700_p10 = scmp.ne.s32.totalorder %s2265_s25, %s1699_s13  ;;  %p1704_p13 = scmp.lt.u32.totalorder %s2265_s25, %s2330_s4 }
 0x1d0   : > { %p1705_p0 = scmp.lt.u32.totalorder %s1703_s24, %s1699_s13  ;;  %p1707_p2 = scmp.lt.u32.totalorder %s1699_s13, %s2265_s25 }
 0x1d1   : > { %p1701_p11 = pnand %p1700_p10, %p1861_p3 }
 0x1d2   : > { %p1706_p1 = por %p1705_p0, %p1704_p13 }
 0x1d3   : > { %p1702_p12 = pneg %p1701_p11 }
 0x1d4   : > { %p1708_p4 = por %p1707_p2, %p1706_p1 }
 0x1d6   : > { %p1709_p5 = pnand %p1708_p4, %p1702_p12 }
 0x1d8   : > { %1712 = shalt.err (!%p1709_p5)
}
 0x1d9   : > { %s1784_s5 = smov 64  }
 0x1da   : > { %1608 = dma.vmem_to_hbm [thread:$0]  (%p1861_p3), %s2267_s8, 1024, %s2265_s25, %s2273_s21, %s1784_s5, %s1784_s5, %s1782_s26  }
 0x1db PF: > { %p1614_p6 = scmp.ge.s32.totalorder %s1779_s22, 2  ;;  %s1274_s6 = sand.u32 1, %s1751_s15  }
 0x1dc   : > { %s1275_s18 = scalar_lea.sflag [#allocation3], %s1274_s6 }
 0x1dd   : > { %p1611_p7 = pnand %p1614_p6, %p1870_p8 }
 0x1df   : > { %1746 = dma.done.wait (!%p1611_p7), %s1275_s18, 1024  }
 0x1e0   : > { %1748 = vsyncadd (!%p1611_p7), %s1275_s18, 4294966272  ;;  %s17_s22 = sadd.s32 1, %s1779_s22   ;;  %s2349_s19 = sld [smem:[#allocation5_spill]] }
 0x1e1   : > { %p14_p9 = scmp.ge.s32.totalorder %s17_s22, 6   ;;  %s2350_s28 = sld [smem:[#allocation6_spill]] }
 0x1e2   : > { %s2351_s21 = sld [smem:[#allocation7_spill]]  ;;  %s2352_s15 = smov %s1755_s16 }
 0x1e3   : > { %s2353_s16 = smov %s1759_s17  ;;  %s2354_s17 = smov %s1879_s7 }
 0x1e4   : > { %s2355_s18 = smov %s1771_s20  ;;  %16 = sbr.rel (!%p14_p9) target bundleno = 5 (0x5), region = 79 }
 0x1e7   : > { %s2356_s20 = smov %s2350_s28 }
 0x1eb   :  { %1280 = vsyncpa [#allocation3], 1 }
 0x1ec   :  { %1282 = vsyncpa [#allocation3 + $0x1], 1 }

</bundles_post_ra>
